<compile_context>
chip_gen: v6e
topology: v6e:2x2x1
jax: 0.10.0
libtpu: 0.0.40
codegen_flags: <defaults>
</compile_context>

<pallas_src>
import functools

import jax
import jax.numpy as jnp
from jax import lax
from jax.experimental import pallas as pl
from jax.experimental.pallas import tpu as pltpu

_LANES = 128
_ROW_ALIGN = 16          # sublane-safe granularity for f32 (8,128) and bf16 (16,128)
_CHUNK_ROWS = 1024       # in-kernel compute chunk: (1024,128) f32 intermediate = 512 KiB
_MIN_ROWS_PER_SHARD = 2048
_ABS_MAX_BLOCK_ROWS = 16384


def _cdiv(a: int, b: int) -> int:
    return -(-a // b)


def _round_up(a: int, b: int) -> int:
    return _cdiv(a, b) * b


def _physical_vmem_bytes() -> int:
    try:
        info = pltpu.get_tpu_info()
        v = getattr(info, "vmem_capacity_bytes", None)
        if v:
            return int(v)
    except Exception:
        pass
    return 64 << 20   # conservative fallback (v7x per-TensorCore VMEM)


def _default_num_shards() -> int:
    # v7x exposes 2 TensorCores per chip; shard the row range so each core
    # streams half of HBM.  v5e/v6e have a single TC.
    # TODO(synk): verify on v7x (xprof) that the leading "parallel" axis really
    # lands on both cores; if not, switch it to pltpu.CORE_PARALLEL.
    try:
        kind = str(jax.devices()[0].device_kind).lower()
    except Exception:
        return 1
    return 2 if ("v7" in kind or "7x" in kind) else 1


def _wmse_kernel(inp_ref, tgt_ref, err_ref, out_ref, acc_ref, *,
                 a, b, inv_n, rows, steps, block_rows, chunk_rows, needs_mask):
    s = pl.program_id(0)          # shard (megacore) axis
    k = pl.program_id(1)          # reduction axis within the shard

    @pl.when(k == 0)
    def _():
        acc_ref[...] = jnp.zeros_like(acc_ref)

    # Virtual (unclamped) start row of this block; used only for tail masking.
    block_start = (s * steps + k) * block_rows

    def accumulate(r0):
        sl = pl.ds(r0, chunk_rows)
        err = err_ref[sl, :].astype(jnp.float32)
        d = inp_ref[sl, :].astype(jnp.float32) - tgt_ref[sl, :].astype(jnp.float32)
        contrib = (err * a + b) * d * d           # folded affine weight, f32
        if needs_mask:
            # Zero out garbage rows of ragged / clamped boundary blocks with a
            # select (never a multiply) so inf/NaN garbage can't leak in.
            row_ids = lax.broadcasted_iota(jnp.int32, contrib.shape, 0)
            contrib = jnp.where(block_start + r0 + row_ids < rows, contrib, 0.0)
        # VPU-only fold of the chunk down to one resident (8,128) vreg.
        acc_ref[...] += contrib.reshape(chunk_rows // 8, 8, _LANES).sum(axis=0)

    n_chunks = block_rows // chunk_rows
    if n_chunks == 1:
        accumulate(0)
    else:
        def body(c, carry):
            accumulate(pl.multiple_of(c * chunk_rows, chunk_rows))
            return carry
        lax.fori_loop(0, n_chunks, body, None)

    @pl.when(k == pl.num_programs(1) - 1)
    def _():
        # In-kernel finalize: cross-lane/sublane reduce + divide by the true n.
        out_ref[...] = (jnp.sum(acc_ref[...]) * inv_n).reshape(1, 1, 1)


def weighted_mse_loss(input_scores, target_scores, standard_errors, *,
                      min_err, max_err, min_weight,
                      num_shards=None, max_block_rows=None):
    """Pallas TPU implementation of WeightedMSELoss.forward (returns f32 scalar)."""
    n = int(input_scores.size)
    assert n > 0
    # Note: max_err == min_err yields inf/NaN exactly like the PyTorch reference.

    x = input_scores.reshape(-1)
    t = target_scores.reshape(-1)
    e = standard_errors.reshape(-1)

    # Fold the weight affine at trace time: w = err*a + b.
    a = (1.0 - float(min_weight)) / (float(max_err) - float(min_err))
    b = float(min_weight) - float(min_err) * a

    # Minimal padding: only up to the next 128-lane boundary (and at least 16
    # rows) so the streams can be viewed as lane-dense (rows, 128) slabs.
    # Padded elements contribute exactly zero (input == target -> diff == 0,
    # err == 0 -> weight == b, finite).  Everything beyond `rows` (ragged
    # boundary blocks) is handled with an in-kernel mask, never with pads.
    n_pad = max(_round_up(n, _LANES), _ROW_ALIGN * _LANES)
    if n_pad != n:
        x = jnp.pad(x, (0, n_pad - n))
        t = jnp.pad(t, (0, n_pad - n))
        e = jnp.pad(e, (0, n_pad - n))
    rows = n_pad // _LANES
    x = x.reshape(rows, _LANES)
    t = t.reshape(rows, _LANES)
    e = e.reshape(rows, _LANES)

    # Generation- and dtype-aware block sizing: biggest lane-dense tile whose
    # three double-buffered input streams fit the scoped-VMEM budget we
    # request (v7x: 64 MiB physical -> 8192 f32 rows; v5e/v6e: 128 MiB ->
    # 10240 f32 rows; bf16 inputs double the row budget automatically).
    itemsize_sum = x.dtype.itemsize + t.dtype.itemsize + e.dtype.itemsize
    vmem_budget = max(16 << 20, min(40 << 20, _physical_vmem_bytes() // 2))
    usable = vmem_budget - (8 << 20)   # headroom for intermediates/out/scratch
    if max_block_rows is None:
        auto = usable // (2 * _LANES * itemsize_sum)
        max_block_rows = min(_ABS_MAX_BLOCK_ROWS,
                             max(_CHUNK_ROWS, (auto // _CHUNK_ROWS) * _CHUNK_ROWS))
    else:
        max_block_rows = max(_ROW_ALIGN, _round_up(int(max_block_rows), _ROW_ALIGN))

    if num_shards is None:
        num_shards = _default_num_shards()
        if rows < num_shards * _MIN_ROWS_PER_SHARD:
            num_shards = 1            # too little data to split across cores
    num_shards = max(1, min(int(num_shards), rows // _ROW_ALIGN))

    rows_per_shard = _cdiv(rows, num_shards)
    if rows_per_shard >= _CHUNK_ROWS and max_block_rows >= _CHUNK_ROWS:
        block_rows = min(max_block_rows,
                         (rows_per_shard // _CHUNK_ROWS) * _CHUNK_ROWS)
    else:
        block_rows = min(max_block_rows,
                         max(_ROW_ALIGN, (rows_per_shard // _ROW_ALIGN) * _ROW_ALIGN))
    chunk_rows = min(block_rows, _CHUNK_ROWS)
    if block_rows % chunk_rows:       # only reachable with odd manual overrides
        chunk_rows = block_rows

    steps = _cdiv(rows_per_shard, block_rows)
    needs_mask = (num_shards * steps * block_rows != rows)
    last_block = _cdiv(rows, block_rows) - 1   # clamp target for OOB virtual blocks

    kernel = functools.partial(
        _wmse_kernel, a=a, b=b, inv_n=1.0 / n, rows=rows, steps=steps,
        block_rows=block_rows, chunk_rows=chunk_rows, needs_mask=needs_mask)

    def in_map(s_, k_):
        # Clamp so a fully-out-of-range virtual block re-reads the last real
        # block instead of DMA-ing past the array; its contribution is zeroed
        # by the in-kernel mask.
        return (jnp.minimum(s_ * steps + k_, last_block), 0)

    in_spec = pl.BlockSpec((block_rows, _LANES), in_map)

    partials = pl.pallas_call(
        kernel,
        out_shape=jax.ShapeDtypeStruct((num_shards, 1, 1), jnp.float32),
        grid_spec=pltpu.PrefetchScalarGridSpec(
            num_scalar_prefetch=0,
            grid=(num_shards, steps),
            in_specs=[in_spec, in_spec, in_spec],
            out_specs=pl.BlockSpec((1, 1, 1), lambda s_, k_: (s_, 0, 0)),
            scratch_shapes=[pltpu.VMEM((8, _LANES), jnp.float32)],
        ),
        compiler_params=pltpu.CompilerParams(
            # shard axis across TensorCores (no-op on 1-TC chips); reduction
            # axis must stay sequential for the resident accumulator.
            dimension_semantics=("parallel", "arbitrary"),
            vmem_limit_bytes=int(vmem_budget),
        ),
    )(x, t, e)

    if num_shards == 1:
        return partials.reshape(())
    return jnp.sum(partials)


def _reference(inp, tgt, err, min_err, max_err, min_weight):
    inp = inp.astype(jnp.float32)
    tgt = tgt.astype(jnp.float32)
    err = err.astype(jnp.float32)
    w = (err - min_err) / (max_err - min_err)
    w = w * (1.0 - min_weight) + min_weight
    return jnp.mean(w * (inp - tgt) ** 2)


if __name__ == "__main__":
    # Module "params" (constructor args) — deterministic, in-script.
    MIN_ERR, MAX_ERR, MIN_WEIGHT = 0.1, 1.2, 0.3
    key = jax.random.PRNGKey(0)

    def make_inputs(k, n, dtype=jnp.float32):
        k1, k2, k3 = jax.random.split(k, 3)
        inp = jax.random.normal(k1, (n,), dtype=jnp.float32).astype(dtype)
        tgt = jax.random.normal(k2, (n,), dtype=jnp.float32).astype(dtype)
        err = jax.random.uniform(k3, (n,), dtype=jnp.float32,
                                 minval=MIN_ERR, maxval=MAX_ERR).astype(dtype)
        return inp, tgt, err

    cases = [
        # (name, n, dtype, kwargs, rtol)
        ("aligned_f32",       2048, jnp.float32, {}, 1e-5),
        ("ragged_lane_f32",   1000, jnp.float32, {}, 1e-5),
        ("ragged_blocks_f32", 5000, jnp.float32, {"max_block_rows": 16}, 1e-5),
        ("two_shards_f32",    9000, jnp.float32,
         {"max_block_rows": 16, "num_shards": 2}, 1e-5),
        ("aligned_bf16",      4096, jnp.bfloat16, {}, 1e-4),
    ]

    for name, n, dtype, kwargs, rtol in cases:
        key, sub = jax.random.split(key)
        inp, tgt, err = make_inputs(sub, n, dtype)
        got = jax.block_until_ready(
            weighted_mse_loss(inp, tgt, err, min_err=MIN_ERR, max_err=MAX_ERR,
                              min_weight=MIN_WEIGHT, **kwargs))
        want = _reference(inp, tgt, err, MIN_ERR, MAX_ERR, MIN_WEIGHT)
        assert jnp.allclose(got, want, rtol=rtol, atol=1e-6), (name, got, want)

    print("KERNEL_OK")
</pallas_src>

<mosaic_0001>
module attributes {stable_mosaic.version = 11 : i64} {
  func.func @_wmse_kernel(%arg0: i32, %arg1: i32, %arg2: memref<16x128xf32, #tpu.memory_space<vmem>>, %arg3: memref<16x128xf32, #tpu.memory_space<vmem>>, %arg4: memref<16x128xf32, #tpu.memory_space<vmem>>, %arg5: memref<1x1x1xf32, #tpu.memory_space<vmem>>, %arg6: memref<8x128xf32, #tpu.memory_space<vmem>>) attributes {dimension_semantics = [#tpu.dimension_semantics<parallel>, #tpu.dimension_semantics<arbitrary>], iteration_bounds = array<i64: 1, 1>, scalar_prefetch = 0 : i64, scratch_operands = 1 : i64, tpu.core_type = #tpu.core_type<tc>, window_params = [{transform_indices = @transform_0, window_bounds = array<i64: 16, 128>}, {transform_indices = @transform_1, window_bounds = array<i64: 16, 128>}, {transform_indices = @transform_2, window_bounds = array<i64: 16, 128>}, {transform_indices = @transform_3, window_bounds = array<i64: 1, 1, 1>}]} {
    %c0_i32 = arith.constant 0 : i32
    %0 = arith.cmpi eq, %arg1, %c0_i32 : i32
    %1 = arith.extui %0 : i1 to i32
    %c0_i32_0 = arith.constant 0 : i32
    %2 = arith.cmpi ne, %1, %c0_i32_0 : i32
    scf.if %2 {
      %cst_14 = arith.constant 0.000000e+00 : f32
      %21 = vector.broadcast %cst_14 : f32 to vector<8x128xf32>
      %c0_15 = arith.constant 0 : index
      %c0_16 = arith.constant 0 : index
      %22 = vector.load %arg6[%c0_15, %c0_16] : memref<8x128xf32, #tpu.memory_space<vmem>>, vector<8x128xf32>
      tpu.vector_store %arg6[%c0_15, %c0_16], %21 {strides = array<i32>} : memref<8x128xf32, #tpu.memory_space<vmem>>, vector<8x128xf32>,
    } else {
    }
    %c0 = arith.constant 0 : index
    %c0_1 = arith.constant 0 : index
    %3 = vector.load %arg4[%c0, %c0_1] : memref<16x128xf32, #tpu.memory_space<vmem>>, vector<16x128xf32>
    %c0_2 = arith.constant 0 : index
    %c0_3 = arith.constant 0 : index
    %4 = vector.load %arg2[%c0_2, %c0_3] : memref<16x128xf32, #tpu.memory_space<vmem>>, vector<16x128xf32>
    %c0_4 = arith.constant 0 : index
    %c0_5 = arith.constant 0 : index
    %5 = vector.load %arg3[%c0_4, %c0_5] : memref<16x128xf32, #tpu.memory_space<vmem>>, vector<16x128xf32>
    %6 = arith.subf %4, %5 : vector<16x128xf32>
    %cst = arith.constant 0.636363626 : f32
    %7 = vector.broadcast %cst : f32 to vector<16x128xf32>
    %8 = arith.mulf %3, %7 : vector<16x128xf32>
    %cst_6 = arith.constant 0.236363634 : f32
    %9 = vector.broadcast %cst_6 : f32 to vector<16x128xf32>
    %10 = arith.addf %8, %9 : vector<16x128xf32>
    %11 = arith.mulf %10, %6 : vector<16x128xf32>
    %12 = arith.mulf %11, %6 : vector<16x128xf32>
    %c0_7 = arith.constant 0 : index
    %c0_8 = arith.constant 0 : index
    %13 = vector.load %arg6[%c0_7, %c0_8] : memref<8x128xf32, #tpu.memory_space<vmem>>, vector<8x128xf32>
    %14 = vector.shape_cast %12 : vector<16x128xf32> to vector<2x8x128xf32>
    %cst_9 = arith.constant dense<0.000000e+00> : vector<8x128xf32>
    %15 = vector.multi_reduction <add>, %14, %cst_9 [0] : vector<2x8x128xf32> to vector<8x128xf32>
    %16 = arith.addf %13, %15 : vector<8x128xf32>
    %c0_10 = arith.constant 0 : index
    %c0_11 = arith.constant 0 : index
    %17 = vector.load %arg6[%c0_10, %c0_11] : memref<8x128xf32, #tpu.memory_space<vmem>>, vector<8x128xf32>
    tpu.vector_store %arg6[%c0_10, %c0_11], %16 {strides = array<i32>} : memref<8x128xf32, #tpu.memory_space<vmem>>, vector<8x128xf32>,
    %c0_i32_12 = arith.constant 0 : i32
    %18 = arith.cmpi eq, %arg1, %c0_i32_12 : i32
    %19 = arith.extui %18 : i1 to i32
    %c0_i32_13 = arith.constant 0 : i32
    %20 = arith.cmpi ne, %19, %c0_i32_13 : i32
    scf.if %20 {
      %c0_14 = arith.constant 0 : index
      %c0_15 = arith.constant 0 : index
      %21 = vector.load %arg6[%c0_14, %c0_15] : memref<8x128xf32, #tpu.memory_space<vmem>>, vector<8x128xf32>
      %22 = vector.shape_cast %21 : vector<8x128xf32> to vector<1x8x128xf32>
      %cst_16 = arith.constant dense<0.000000e+00> : vector<1xf32>
      %23 = vector.multi_reduction <add>, %22, %cst_16 [1, 2] : vector<1x8x128xf32> to vector<1xf32>
      %24 = vector.shape_cast %23 : vector<1xf32> to vector<1x1x1xf32>
      %25 = vector.extract %24[0, 0, 0] : f32 from vector<1x1x1xf32>
      %cst_17 = arith.constant 4.8828125E-4 : f32
      %26 = arith.mulf %25, %cst_17 : f32
      %27 = vector.broadcast %26 : f32 to vector<1x1x1xf32>
      %c0_18 = arith.constant 0 : index
      %c0_19 = arith.constant 0 : index
      %c0_20 = arith.constant 0 : index
      %28 = vector.load %arg5[%c0_18, %c0_19, %c0_20] : memref<1x1x1xf32, #tpu.memory_space<vmem>>, vector<1x1x1xf32>
      tpu.vector_store %arg5[%c0_18, %c0_19, %c0_20], %27 {strides = array<i32>} : memref<1x1x1xf32, #tpu.memory_space<vmem>>, vector<1x1x1xf32>,
    } else {
    }
    return
  }
  func.func @transform_0(%arg0: i32, %arg1: i32) -> (i32, i32) {
    %c1_i32 = arith.constant 1 : i32
    %0 = arith.muli %arg0, %c1_i32 : i32
    %1 = arith.addi %0, %arg1 : i32
    %c0_i32 = arith.constant 0 : i32
    %2 = arith.minsi %1, %c0_i32 : i32
    %c0_i32_0 = arith.constant 0 : i32
    %c0_i32_1 = arith.constant 0 : i32
    return %2, %c0_i32_0 : i32, i32
  }
  func.func @transform_1(%arg0: i32, %arg1: i32) -> (i32, i32) {
    %c1_i32 = arith.constant 1 : i32
    %0 = arith.muli %arg0, %c1_i32 : i32
    %1 = arith.addi %0, %arg1 : i32
    %c0_i32 = arith.constant 0 : i32
    %2 = arith.minsi %1, %c0_i32 : i32
    %c0_i32_0 = arith.constant 0 : i32
    %c0_i32_1 = arith.constant 0 : i32
    return %2, %c0_i32_0 : i32, i32
  }
  func.func @transform_2(%arg0: i32, %arg1: i32) -> (i32, i32) {
    %c1_i32 = arith.constant 1 : i32
    %0 = arith.muli %arg0, %c1_i32 : i32
    %1 = arith.addi %0, %arg1 : i32
    %c0_i32 = arith.constant 0 : i32
    %2 = arith.minsi %1, %c0_i32 : i32
    %c0_i32_0 = arith.constant 0 : i32
    %c0_i32_1 = arith.constant 0 : i32
    return %2, %c0_i32_0 : i32, i32
  }
  func.func @transform_3(%arg0: i32, %arg1: i32) -> (i32, i32, i32) {
    %c0_i32 = arith.constant 0 : i32
    %c0_i32_0 = arith.constant 0 : i32
    %c0_i32_1 = arith.constant 0 : i32
    return %arg0, %c0_i32, %c0_i32_0 : i32, i32, i32
  }
}

</mosaic_0001>

<bundles_post_ra>
// kernel: tpu_custom_call.1
= control target key start
LH: loop header
LB: loop body
LE: loop exit
PB: predicated region body
PF: predicated region fallthrough
CT: control target
= control target key end

     0   :  { %8 = vsyncpa [#allocation4], 0  ;;  %s282_s0 = inlined_call_operand.hbm [shape: f32[16,128], index: 0, kind: input, shape index: {}]   ;;  %s283_s1 = inlined_call_operand.hbm [shape: f32[16,128], index: 1, kind: input, shape index: {}]   ;;  %s284_s2 = inlined_call_operand.hbm [shape: f32[16,128], index: 2, kind: input, shape index: {}]   ;;  %s285_s3 = inlined_call_operand.hbm [shape: f32[1,1,1], index: 3, kind: output, shape index: {}]  }
   0x1   :  { %9 = vsyncpa [#allocation7], 0 }
   0x2   :  { %10 = vsyncpa [#allocation5], 0  ;;  %s244_s12 = smov [#allocation6]   ;;  %s245_s14 = smov [#allocation3]  }
   0x3   :  { %s40_s13 = sshll.u32 %s244_s12, 4  ;;  %s22_s15 = sshll.u32 %s245_s14, 4  ;;  %s41_s13 = int_to_ptr.vmem [resolvable:$true] %s40_s13  ;;  %s23_s15 = int_to_ptr.vmem [resolvable:$true] %s22_s15 }
   0x4   :  { %s166_s16 = scalar_lea.vmem %s41_s13, 256  ;;  %p171_p1 = scmp.lt.s32.totalorder %s41_s13, %s41_s13 }
   0x5   :  { %p167_p0 = scmp.ne.s32.totalorder %s41_s13, %s166_s16  ;;  %p172_p2 = scmp.lt.s32.totalorder %s166_s16, %s166_s16 }
   0x7   :  { %p173_p3 = por %p172_p2, %p171_p1 }
   0x9   :  { %p174_p4 = pnand %p173_p3, %p167_p0 }
   0xb   :  { %177 = shalt.err (!%p174_p4)
}
   0xc   :  { %s246_s17 = smov 128   ;;  %s247_s18 = smov 8  }
   0xd   :  { %46 = dma.hbm_to_vmem [thread:$0]  %s283_s1, 256, %s41_s13, [#allocation7], %s246_s17, %s246_s17, %s247_s18  }
   0xe   :  { %s186_s21 = scalar_lea.vmem %s23_s15, 256  ;;  %p191_p6 = scmp.lt.s32.totalorder %s23_s15, %s23_s15 }
   0xf   :  { %p187_p5 = scmp.ne.s32.totalorder %s23_s15, %s186_s21  ;;  %p192_p7 = scmp.lt.s32.totalorder %s186_s21, %s186_s21 }
  0x11   :  { %p193_p8 = por %p192_p7, %p191_p6 }
  0x13   :  { %p194_p9 = pnand %p193_p8, %p187_p5 }
  0x15   :  { %197 = shalt.err (!%p194_p9)
}
  0x16   :  { %28 = dma.hbm_to_vmem [thread:$0]  %s282_s0, 256, %s23_s15, [#allocation4], %s246_s17, %s246_s17, %s247_s18  }
  0x17   :  { %s248_s24 = smov [#allocation8]  }
  0x18   :  { %s58_s25 = sshll.u32 %s248_s24, 4  ;;  %s59_s25 = int_to_ptr.vmem [resolvable:$true] %s58_s25 }
  0x19   :  { %s206_s26 = scalar_lea.vmem %s59_s25, 256  ;;  %p211_p11 = scmp.lt.s32.totalorder %s59_s25, %s59_s25 }
  0x1a   :  { %p207_p10 = scmp.ne.s32.totalorder %s59_s25, %s206_s26  ;;  %p212_p12 = scmp.lt.s32.totalorder %s206_s26, %s206_s26 }
  0x1c   :  { %p213_p13 = por %p212_p12, %p211_p11 }
  0x1e   :  { %p214_p0 = pnand %p213_p13, %p207_p10 }
  0x20   :  { %217 = shalt.err (!%p214_p0)
}
  0x21   :  { %64 = dma.hbm_to_vmem [thread:$0]  %s284_s2, 256, %s59_s25, [#allocation7], %s246_s17, %s246_s17, %s247_s18  }
  0x22   :  { %238 = dma.done.wait [#allocation4], 256  }
  0x23   :  { %239 = vsyncadd [#allocation4], 4294967040 }
  0x24   :  { %240 = dma.done.wait [#allocation7], 512  }
  0x25   :  { %241 = vsyncadd [#allocation7], 4294966784  ;;  %v91_v0 = vld [vmem:[#allocation8] sm:$0xff]  ;;  %v92_v1 = vld [vmem:[#allocation8 + $0x8] sm:$0xff]  ;;  %s249_s0 = smov [#allocation9]   ;;  %vm126_vm0 = vcmask 0  }
  0x26   :  { %v93_v2 = vld [vmem:[#allocation3] sm:$0xff]  ;;  %v94_v3 = vld [vmem:[#allocation3 + $0x8] sm:$0xff]  ;;  %v95_v4 = vld [vmem:[#allocation6] sm:$0xff]  ;;  %v99_v6 = vmul.f32 0.6363636, %v91_v0  ;;  %s134_s2 = sshll.u32 %s249_s0, 4  ;;  %s135_s2 = int_to_ptr.vmem [resolvable:$true] %s134_s2 }
  0x27   :  { %v96_v5 = vld [vmem:[#allocation6 + $0x8] sm:$0xff]  ;;  %v97_v7 = vsub.f32 %v93_v2, %v95_v4  ;;  %v100_v9 = vmul.f32 0.6363636, %v92_v1  ;;  %s218_s30 = scalar_lea.vmem %s135_s2, 16  ;;  %s222_s4 = scalar_lea.vmem %s135_s2, 32 }
  0x28   :  { %v98_v8 = vsub.f32 %v94_v3, %v96_v5  ;;  %v101_v10 = vadd.f32 0.23636363, %v99_v6  ;;  %p219_p1 = scmp.ne.s32.totalorder %s135_s2, %s218_s30  ;;  %p223_p2 = scmp.lt.s32.totalorder %s135_s2, %s135_s2 }
  0x29   :  { %v102_v11 = vadd.f32 0.23636363, %v100_v9  ;;  %p224_p3 = scmp.lt.s32.totalorder %s222_s4, %s218_s30 }
  0x2a   :  { %v103_v12 = vmul.f32 %v101_v10, %v97_v7 }
  0x2b   :  { %v104_v13 = vmul.f32 %v102_v11, %v98_v8  ;;  %p225_p4 = por %p224_p3, %p223_p2 }
  0x2c   :  { %v105_v14 = vmul.f32 %v103_v12, %v97_v7 }
  0x2d   :  { %v106_v15 = vmul.f32 %v104_v13, %v98_v8  ;;  %p226_p5 = pnand %p225_p4, %p219_p1 }
  0x2f   :  { %v108_v16 = vadd.f32 %v106_v15, %v105_v14 }
  0x31   :  { %115 = vadd.xlane.f32.xlu0 %v108_v16 }
  0xba   :  { %v116_v17 = vpop.xlane.xlu0 %115 }
  0xbb   :  { %v117_v18 = vrot.slane %v116_v17, 4 }
  0xbd   :  { %v118_v19 = vadd.f32 %v117_v18, %v116_v17 }
  0xbf   :  { %v119_v20 = vrot.slane %v118_v19, 2 }
  0xc1   :  { %v120_v21 = vadd.f32 %v119_v20, %v118_v19 }
  0xc3   :  { %v121_v22 = vrot.slane %v120_v21, 1 }
  0xc5   :  { %v122_v23 = vadd.f32 %v121_v22, %v120_v21 }
  0xc7   :  { %150 = vpush %v122_v23 }
  0xf8   :  { %s151_s28 = spop %150 }
  0xf9   :  { %s124_s29 = smul.f32 0.00048828125, %s151_s28 }
  0xfb   :  { %v125_v24 = vstv %s124_s29 }
  0xfc   :  { %127 = vst.msk [vmem:[#allocation9] sm:$0x1] %vm126_vm0, %v125_v24 }
  0xfd   :  { %229 = shalt.err (!%p226_p5)
}
  0xfe   :  { %137 = dma.vmem_to_hbm [thread:$0]  %s135_s2, 16, %s285_s3, [#allocation5]  }
  0xff   :  { %242 = dma.done.wait [#allocation5], 16  }
 0x100   :  { %243 = vsyncadd [#allocation5], 4294967280 }
 0x101   :  { %141 = vsyncpa [#allocation4], 1 }
 0x102   :  { %142 = vsyncpa [#allocation7], 1 }
 0x103   :  { %143 = vsyncpa [#allocation5], 1 }

</bundles_post_ra>
